<compile_context>
chip_gen: v5e
topology: v5e:2x2
jax: 0.10.0
libtpu: 0.0.40
codegen_flags: <defaults>
</compile_context>

<pallas_src>
import jax
import jax.numpy as jnp
from jax.experimental import pallas as pl
from jax.experimental.pallas import tpu as pltpu

_PACK = 8  # logical batch rows packed per physical (128-lane) row


def _mlp_kernel(x_ref, w1_ref, b1_ref, w2_ref, b2_ref, o_ref):
    # One packed batch tile per grid step; both matmuls + bias + ReLU fused in VMEM.
    x = x_ref[...]                                                    # (TB, P*D_in)
    h = jnp.dot(x, w1_ref[...], preferred_element_type=jnp.float32)  # (TB, P*H)
    h = jnp.maximum(h + b1_ref[...], 0.0)                            # bias + ReLU
    y = jnp.dot(h, w2_ref[...], preferred_element_type=jnp.float32)  # (TB, P*D_out)
    o_ref[...] = (y + b2_ref[...]).astype(o_ref.dtype)


def _round_up(n, m):
    return ((n + m - 1) // m) * m


def very_cool_model(x, w1, b1, w2, b2, *, tb_packed=4096):
    """x: (B, D_in) f32; w1: (D_in, H); b1: (H,); w2: (H, D_out); b2: (D_out,)."""
    B, D_in = x.shape
    H = w1.shape[1]
    D_out = w2.shape[1]
    P = _PACK

    # ---- Pack 8 logical rows per physical row (lane-dense DMA) ----
    B8 = _round_up(B, P)
    if B8 != B:
        x = jnp.pad(x, ((0, B8 - B), (0, 0)))      # <=7 rows; skipped when B % 8 == 0
    n_rows = B8 // P
    x_packed = x.reshape(n_rows, P * D_in)          # contiguous reshape -> free

    # Block-diagonal weights / tiled biases so packed rows stay independent.
    w1_p = jnp.kron(jnp.eye(P, dtype=w1.dtype), w1)          # (P*D_in, P*H)   = (80, 128)
    w2_p = jnp.kron(jnp.eye(P, dtype=w2.dtype), w2)          # (P*H, P*D_out)  = (128, 16)
    b1_p = jnp.tile(b1, P).reshape(1, P * H)                 # (1, 128)
    b2_p = jnp.tile(b2, P).reshape(1, P * D_out)             # (1, 16)

    # ---- Tile selection ----
    if n_rows <= 2 * P:
        TB = n_rows                                  # single full-array block (tiny batches)
    else:
        # >=2 grid steps for mid-size B (dual-TC on v7x), capped at tb_packed for large B.
        TB = min(tb_packed, _round_up(pl.cdiv(n_rows, 2), P))
    grid = (pl.cdiv(n_rows, TB),)

    # VMEM budget: x + out blocks each lane-pad to TB*128*4 B and are double-buffered.
    tile_bytes = TB * 128 * 4
    vmem_limit = int(min(max(4 * tile_bytes + (4 << 20), 16 << 20), 48 << 20))

    out_packed = pl.pallas_call(
        _mlp_kernel,
        out_shape=jax.ShapeDtypeStruct((n_rows, P * D_out), x.dtype),
        grid_spec=pl.GridSpec(
            grid=grid,
            in_specs=[
                pl.BlockSpec((TB, P * D_in), lambda i: (i, 0)),      # x: tiled over packed rows
                pl.BlockSpec((P * D_in, P * H), lambda i: (0, 0)),   # w1_p: resident
                pl.BlockSpec((1, P * H), lambda i: (0, 0)),          # b1_p: resident
                pl.BlockSpec((P * H, P * D_out), lambda i: (0, 0)),  # w2_p: resident
                pl.BlockSpec((1, P * D_out), lambda i: (0, 0)),      # b2_p: resident
            ],
            out_specs=pl.BlockSpec((TB, P * D_out), lambda i: (i, 0)),
        ),
        compiler_params=pltpu.CompilerParams(
            dimension_semantics=("parallel",),       # shards across both TCs on v7x
            vmem_limit_bytes=vmem_limit,
        ),
    )(x_packed, w1_p, b1_p, w2_p, b2_p)

    out = out_packed.reshape(n_rows * P, D_out)      # contiguous reshape -> free
    return out[:B] if B8 != B else out


def _reference(x, w1, b1, w2, b2):
    h = jnp.maximum(x @ w1 + b1, 0.0)
    return h @ w2 + b2


if __name__ == "__main__":
    input_size, hidden_size, output_size = 10, 16, 2

    key = jax.random.PRNGKey(0)
    kx, k1, k2, k3, k4, kx2 = jax.random.split(key, 6)

    # Deterministic parameter init (mimicking nn.Linear's uniform(-1/sqrt(fan_in), +)).
    bound1 = 1.0 / float(jnp.sqrt(jnp.float32(input_size)))
    bound2 = 1.0 / float(jnp.sqrt(jnp.float32(hidden_size)))
    w1 = jax.random.uniform(k1, (input_size, hidden_size), jnp.float32, -bound1, bound1)
    b1 = jax.random.uniform(k2, (hidden_size,), jnp.float32, -bound1, bound1)
    w2 = jax.random.uniform(k3, (hidden_size, output_size), jnp.float32, -bound2, bound2)
    b2 = jax.random.uniform(k4, (output_size,), jnp.float32, -bound2, bound2)

    # Check 1: tiny batch (single full-array block path).
    batch = 8
    x = jax.random.normal(kx, (batch, input_size), jnp.float32)
    out = jax.block_until_ready(very_cool_model(x, w1, b1, w2, b2))
    ref = _reference(x, w1, b1, w2, b2)
    assert out.shape == (batch, output_size)
    assert jnp.allclose(out, ref, atol=1e-5, rtol=1e-5), "mismatch vs reference (B=8)"

    # Check 2: ragged batch -> 2-step parallel grid + partial last block (no full pad of x).
    batch2 = 130
    x2 = jax.random.normal(kx2, (batch2, input_size), jnp.float32)
    out2 = jax.block_until_ready(very_cool_model(x2, w1, b1, w2, b2))
    ref2 = _reference(x2, w1, b1, w2, b2)
    assert out2.shape == (batch2, output_size)
    assert jnp.allclose(out2, ref2, atol=1e-5, rtol=1e-5), "mismatch vs reference (B=130)"

    print("KERNEL_OK")
</pallas_src>

<mosaic_0001>
module attributes {stable_mosaic.version = 11 : i64} {
  func.func @_mlp_kernel(%arg0: i32, %arg1: memref<1x80xf32, #tpu.memory_space<vmem>>, %arg2: memref<80x128xf32, #tpu.memory_space<vmem>>, %arg3: memref<1x128xf32, #tpu.memory_space<vmem>>, %arg4: memref<128x16xf32, #tpu.memory_space<vmem>>, %arg5: memref<1x16xf32, #tpu.memory_space<vmem>>, %arg6: memref<1x16xf32, #tpu.memory_space<vmem>>) attributes {dimension_semantics = [#tpu.dimension_semantics<parallel>], iteration_bounds = array<i64: 1>, scalar_prefetch = 0 : i64, scratch_operands = 0 : i64, tpu.core_type = #tpu.core_type<tc>, window_params = [{transform_indices = @transform_0, window_bounds = array<i64: 1, 80>}, {pipeline_mode = #tpu.pipeline_mode<synchronous>, transform_indices = @transform_1, window_bounds = array<i64: 80, 128>}, {pipeline_mode = #tpu.pipeline_mode<synchronous>, transform_indices = @transform_2, window_bounds = array<i64: 1, 128>}, {pipeline_mode = #tpu.pipeline_mode<synchronous>, transform_indices = @transform_3, window_bounds = array<i64: 128, 16>}, {pipeline_mode = #tpu.pipeline_mode<synchronous>, transform_indices = @transform_4, window_bounds = array<i64: 1, 16>}, {transform_indices = @transform_5, window_bounds = array<i64: 1, 16>}]} {
    %c0 = arith.constant 0 : index
    %c0_0 = arith.constant 0 : index
    %0 = vector.load %arg1[%c0, %c0_0] : memref<1x80xf32, #tpu.memory_space<vmem>>, vector<1x80xf32>
    %c0_1 = arith.constant 0 : index
    %c0_2 = arith.constant 0 : index
    %1 = vector.load %arg2[%c0_1, %c0_2] : memref<80x128xf32, #tpu.memory_space<vmem>>, vector<80x128xf32>
    %cst = arith.constant dense<0.000000e+00> : vector<1x128xf32>
    %2 = tpu.matmul %0, %1, %cst {dimension_numbers = #tpu.dot_dimension_numbers<[1], [0], [0], [1], [0, 0, 1, 1], [], []>} : vector<1x80xf32>, vector<80x128xf32>, vector<1x128xf32> -> vector<1x128xf32>
    %c0_3 = arith.constant 0 : index
    %c0_4 = arith.constant 0 : index
    %3 = vector.load %arg3[%c0_3, %c0_4] : memref<1x128xf32, #tpu.memory_space<vmem>>, vector<1x128xf32>
    %4 = arith.addf %2, %3 : vector<1x128xf32>
    %cst_5 = arith.constant 0.000000e+00 : f32
    %5 = vector.broadcast %cst_5 : f32 to vector<1x128xf32>
    %6 = arith.maximumf %4, %5 : vector<1x128xf32>
    %c0_6 = arith.constant 0 : index
    %c0_7 = arith.constant 0 : index
    %7 = vector.load %arg4[%c0_6, %c0_7] : memref<128x16xf32, #tpu.memory_space<vmem>>, vector<128x16xf32>
    %cst_8 = arith.constant dense<0.000000e+00> : vector<1x16xf32>
    %8 = tpu.matmul %6, %7, %cst_8 {dimension_numbers = #tpu.dot_dimension_numbers<[1], [0], [0], [1], [0, 0, 1, 1], [], []>} : vector<1x128xf32>, vector<128x16xf32>, vector<1x16xf32> -> vector<1x16xf32>
    %c0_9 = arith.constant 0 : index
    %c0_10 = arith.constant 0 : index
    %9 = vector.load %arg5[%c0_9, %c0_10] : memref<1x16xf32, #tpu.memory_space<vmem>>, vector<1x16xf32>
    %10 = arith.addf %8, %9 : vector<1x16xf32>
    %c0_11 = arith.constant 0 : index
    %c0_12 = arith.constant 0 : index
    %11 = vector.load %arg6[%c0_11, %c0_12] : memref<1x16xf32, #tpu.memory_space<vmem>>, vector<1x16xf32>
    tpu.vector_store %arg6[%c0_11, %c0_12], %10 {strides = array<i32>} : memref<1x16xf32, #tpu.memory_space<vmem>>, vector<1x16xf32>,
    return
  }
  func.func @transform_0(%arg0: i32) -> (i32, i32) {
    %c0_i32 = arith.constant 0 : i32
    %c0_i32_0 = arith.constant 0 : i32
    return %arg0, %c0_i32 : i32, i32
  }
  func.func @transform_1(%arg0: i32) -> (i32, i32) {
    %c0_i32 = arith.constant 0 : i32
    %c0_i32_0 = arith.constant 0 : i32
    %c0_i32_1 = arith.constant 0 : i32
    return %c0_i32, %c0_i32_0 : i32, i32
  }
  func.func @transform_2(%arg0: i32) -> (i32, i32) {
    %c0_i32 = arith.constant 0 : i32
    %c0_i32_0 = arith.constant 0 : i32
    %c0_i32_1 = arith.constant 0 : i32
    return %c0_i32, %c0_i32_0 : i32, i32
  }
  func.func @transform_3(%arg0: i32) -> (i32, i32) {
    %c0_i32 = arith.constant 0 : i32
    %c0_i32_0 = arith.constant 0 : i32
    %c0_i32_1 = arith.constant 0 : i32
    return %c0_i32, %c0_i32_0 : i32, i32
  }
  func.func @transform_4(%arg0: i32) -> (i32, i32) {
    %c0_i32 = arith.constant 0 : i32
    %c0_i32_0 = arith.constant 0 : i32
    %c0_i32_1 = arith.constant 0 : i32
    return %c0_i32, %c0_i32_0 : i32, i32
  }
  func.func @transform_5(%arg0: i32) -> (i32, i32) {
    %c0_i32 = arith.constant 0 : i32
    %c0_i32_0 = arith.constant 0 : i32
    return %arg0, %c0_i32 : i32, i32
  }
}

</mosaic_0001>

<bundles_post_ra>
// kernel: tpu_custom_call.1
= control target key start
LH: loop header
LB: loop body
LE: loop exit
PB: predicated region body
PF: predicated region fallthrough
CT: control target
= control target key end

     0   :  { %s262_s0 = inlined_call_operand.vmem [shape: f32[1,80], index: 0, kind: input, shape index: {}]   ;;  %s263_s1 = inlined_call_operand.vmem [shape: f32[80,128], index: 1, kind: input, shape index: {}]   ;;  %s264_s2 = inlined_call_operand.vmem [shape: f32[1,128], index: 2, kind: input, shape index: {}]   ;;  %s265_s3 = inlined_call_operand.vmem [shape: f32[128,16], index: 3, kind: input, shape index: {}]   ;;  %s266_s4 = inlined_call_operand.vmem [shape: f32[1,16], index: 4, kind: input, shape index: {}]   ;;  %s267_s5 = inlined_call_operand.hbm [shape: f32[1,16], index: 5, kind: output, shape index: {}]  }
   0x1   :  { %v31_v0 = vld [vmem:[%s263_s1 + $0x48] sm:$0xff]  ;;  %v30_v1 = vld [vmem:[%s263_s1 + $0x40] sm:$0xff]  ;;  %v29_v2 = vld [vmem:[%s263_s1 + $0x38] sm:$0xff] }
   0x2   :  { %43 = vmatpush.msra.mxu0 %v31_v0  ;;  %v73_v3 = vld [vmem:[%s265_s3 + $0x78] sm:$0xff]  ;;  %v28_v4 = vld [vmem:[%s263_s1 + $0x30] sm:$0xff]  ;;  %v71_v6 = vld [vmem:[%s265_s3 + $0x68] sm:$0xff] }
   0x3   :  { %75 = vmatpush.msra.mxu1 %v73_v3  ;;  %v72_v5 = vld [vmem:[%s265_s3 + $0x70] sm:$0xff]  ;;  %v27_v7 = vld [vmem:[%s263_s1 + $0x28] sm:$0xff]  ;;  %v70_v8 = vld [vmem:[%s265_s3 + $0x60] sm:$0xff] }
   0x4   :  { %44 = vmatpush.msra.mxu0 %v30_v1  ;;  %v26_v9 = vld [vmem:[%s263_s1 + $0x20] sm:$0xff] }
   0x5   :  { %76 = vmatpush.msra.mxu1 %v72_v5 }
   0x6   :  { %45 = vmatpush.msra.mxu0 %v29_v2 }
   0x7   :  { %77 = vmatpush.msra.mxu1 %v71_v6 }
   0x8   :  { %46 = vmatpush.msra.mxu0 %v28_v4 }
   0x9   :  { %10 = vsyncpa [#allocation3], 0  ;;  %v69_v10 = vld [vmem:[%s265_s3 + $0x58] sm:$0xff]  ;;  %78 = vmatpush.msra.mxu1 %v70_v8  ;;  %v68_v12 = vld [vmem:[%s265_s3 + $0x50] sm:$0xff]  ;;  %vm33_vm0 = vcmask 654336   ;;  %s141_s24 = smov [#allocation2]  }
   0xa   :  { %47 = vmatpush.msra.mxu0 %v27_v7  ;;  %v25_v11 = vld [vmem:[%s263_s1 + $0x18] sm:$0xff]  ;;  %v24_v13 = vld [vmem:[%s263_s1 + $0x10] sm:$0xff]  ;;  %v67_v14 = vld [vmem:[%s265_s3 + $0x48] sm:$0xff]  ;;  %s102_s25 = sshll.u32 %s141_s24, 4  ;;  %s104_s28 = sshll.u32 %s267_s5, 4  ;;  %vm95_vm1 = vcmask 122880   ;;  %s103_s25 = int_to_ptr.vmem [resolvable:$true] %s102_s25  ;;  %s105_s28 = int_to_ptr.hbm [resolvable:$true] %s104_s28 }
   0xb   :  { %79 = vmatpush.msra.mxu1 %v69_v10  ;;  %v23_v15 = vld [vmem:[%s263_s1 + $0x8] sm:$0xff]  ;;  %v66_v16 = vld [vmem:[%s265_s3 + $0x40] sm:$0xff]  ;;  %v65_v19 = vld [vmem:[%s265_s3 + $0x38] sm:$0xff] }
   0xc   :  { %48 = vmatpush.msra.mxu0 %v26_v9  ;;  %v22_v17 = vld [vmem:[%s263_s1] sm:$0xff]  ;;  %v64_v20 = vld [vmem:[%s265_s3 + $0x30] sm:$0xff]  ;;  %v63_v21 = vld [vmem:[%s265_s3 + $0x28] sm:$0xff] }
   0xd   :  { %80 = vmatpush.msra.mxu1 %v68_v12  ;;  %v21_v18 = vld [vmem:[%s262_s0] sm:$0x1]  ;;  %v61_v23 = vld [vmem:[%s265_s3 + $0x18] sm:$0xff]  ;;  %v60_v24 = vld [vmem:[%s265_s3 + $0x10] sm:$0xff] }
   0xe   :  { %49 = vmatpush.msra.mxu0 %v25_v11  ;;  %v62_v22 = vld [vmem:[%s265_s3 + $0x20] sm:$0xff]  ;;  %v59_v25 = vld [vmem:[%s265_s3 + $0x8] sm:$0xff] }
   0xf   :  { %81 = vmatpush.msra.mxu1 %v67_v14  ;;  %v58_v26 = vld [vmem:[%s265_s3] sm:$0xff] }
  0x10   :  { %50 = vmatpush.msra.mxu0 %v24_v13  ;;  %v32_v27 = vld [vmem:[%s264_s2] sm:$0x1] }
  0x11   :  { %82 = vmatpush.msra.mxu1 %v66_v16  ;;  %v74_v31 = vld [vmem:[%s266_s4] sm:$0x1] }
  0x12   :  { %51 = vmatpush.msra.mxu0 %v23_v15 }
  0x13   :  { %83 = vmatpush.msra.mxu1 %v65_v19 }
  0x14   :  { %52 = vmatpush.msra.mxu0 %v22_v17 }
  0x15   :  { %113 = vmatmul.msk.f32.vlgmr.msra.gmra.mxu0 %vm33_vm0, %v21_v18  ;;  %84 = vmatpush.msra.mxu1 %v64_v20 }
  0x17   :  { %85 = vmatpush.msra.mxu1 %v63_v21 }
  0x19   :  { %86 = vmatpush.msra.mxu1 %v62_v22 }
  0x1b   :  { %87 = vmatpush.msra.mxu1 %v61_v23 }
  0x1d   :  { %88 = vmatpush.msra.mxu1 %v60_v24 }
  0x1f   :  { %89 = vmatpush.msra.mxu1 %v59_v25 }
  0x21   :  { %90 = vmatpush.msra.mxu1 %v58_v26 }
  0x92   :  { %v54_v28 = vpop.f32.mrf.mxu0 }
  0x93   :  { %v55_v29 = vadd.f32 %v54_v28, %v32_v27 }
  0x95   :  { %v57_v30 = vmax.f32 %v55_v29, 0.0 }
  0x97   :  { %91 = vmatmul.f32.vlgmr.msra.gmra.mxu1 %v57_v30 }
 0x114   :  { %v92_v32 = vpop.f32.mrf.mxu1 }
 0x115   :  { %v93_v33 = vadd.f32 %v92_v32, %v74_v31 }
 0x117   :  { %96 = vst.msk [vmem:[#allocation2] sm:$0x1] %vm95_vm1, %v93_v33 }
 0x118   :  { %107 = dma.vmem_to_hbm [thread:$0]  %s103_s25, 16, %s105_s28, [#allocation3]  }
 0x119   :  { %139 = dma.done.wait [#allocation3], 16  }
 0x11a   :  { %140 = vsyncadd [#allocation3], 4294967280 }
 0x11b   :  { %112 = vsyncpa [#allocation3], 1 }

</bundles_post_ra>
